<compile_context>
chip_gen: v5e
topology: v5e:2x2
jax: 0.10.0
libtpu: 0.0.40
codegen_flags: <defaults>
</compile_context>

<pallas_src>
import functools
import math

import numpy as np

import jax
import jax.numpy as jnp
from jax import lax
from jax.experimental import pallas as pl
from jax.experimental.pallas import tpu as pltpu

NEG_SLOPE = 0.01   # nn.LeakyReLU default
LN_EPS = 1e-5      # nn.LayerNorm default


def _leaky_relu(x):
    return jnp.where(x >= 0.0, x, NEG_SLOPE * x)


def _layernorm(x, g, b):
    mu = jnp.mean(x, axis=-1, keepdims=True)
    var = jnp.mean((x - mu) ** 2, axis=-1, keepdims=True)
    return (x - mu) * lax.rsqrt(var + LN_EPS) * g + b


# ------------------------------------------------------------------
# Kernel 1: fused GCN branch  A_hat @ (X W) + b -> LeakyReLU -> fc ->
#           LeakyReLU -> node_proj.  grid=(2,) handles both branches.
# ------------------------------------------------------------------
def _gcn_chain_kernel(a_ref, x_ref, wg_ref, bg_ref, wf_ref, bf_ref,
                      wn_ref, bn_ref, o_ref):
    a = a_ref[0]                                             # (N, N) bf16
    x = x_ref[0]                                             # (N, F) bf16
    xw = jnp.dot(x, wg_ref[0], preferred_element_type=jnp.float32)
    h = jnp.dot(a, xw.astype(jnp.bfloat16),
                preferred_element_type=jnp.float32) + bg_ref[0]
    h = _leaky_relu(h)
    h = _leaky_relu(jnp.dot(h.astype(jnp.bfloat16), wf_ref[0],
                            preferred_element_type=jnp.float32) + bf_ref[0])
    # dropout = identity (eval)
    o_ref[0] = (jnp.dot(h.astype(jnp.bfloat16), wn_ref[0],
                        preferred_element_type=jnp.float32) + bn_ref[0])


def pallas_gcn_branches(a1, x1, a2, x2, pk):
    # TODO(synk): for very large node counts (N ~ 2-4k) the dense adjacency should be
    # row/K-tiled with an f32 accumulator and an explicit vmem_limit_bytes (v7x has
    # 64 MiB VMEM, v5e's default scoped limit is 16 MiB); at these sizes one bf16
    # block per branch is optimal.
    n1, n2 = x1.shape[0], x2.shape[0]
    nmax = max(n1, n2)
    nmax_pad = ((nmax + 7) // 8) * 8
    f = x1.shape[1]
    dm = pk["gcn_wn"].shape[-1]

    a_stack = jnp.stack([
        jnp.pad(a1, ((0, nmax_pad - n1), (0, nmax_pad - n1))),
        jnp.pad(a2, ((0, nmax_pad - n2), (0, nmax_pad - n2))),
    ]).astype(jnp.bfloat16)
    x_stack = jnp.stack([
        jnp.pad(x1, ((0, nmax_pad - n1), (0, 0))),
        jnp.pad(x2, ((0, nmax_pad - n2), (0, 0))),
    ]).astype(jnp.bfloat16)

    od = pk["gcn_wf"].shape[-1]
    out = pl.pallas_call(
        _gcn_chain_kernel,
        out_shape=jax.ShapeDtypeStruct((2, nmax_pad, dm), jnp.float32),
        grid=(2,),
        in_specs=[
            pl.BlockSpec((1, nmax_pad, nmax_pad), lambda g: (g, 0, 0)),
            pl.BlockSpec((1, nmax_pad, f), lambda g: (g, 0, 0)),
            pl.BlockSpec((1, f, f), lambda g: (g, 0, 0)),
            pl.BlockSpec((1, 1, f), lambda g: (g, 0, 0)),
            pl.BlockSpec((1, f, od), lambda g: (g, 0, 0)),
            pl.BlockSpec((1, 1, od), lambda g: (g, 0, 0)),
            pl.BlockSpec((1, od, dm), lambda g: (g, 0, 0)),
            pl.BlockSpec((1, 1, dm), lambda g: (g, 0, 0)),
        ],
        out_specs=pl.BlockSpec((1, nmax_pad, dm), lambda g: (g, 0, 0)),
        compiler_params=pltpu.CompilerParams(dimension_semantics=("parallel",)),
    )(a_stack, x_stack,
      pk["gcn_wg"], pk["gcn_bg"], pk["gcn_wf"], pk["gcn_bf"],
      pk["gcn_wn"], pk["gcn_bn"])
    return out[0, :n1], out[1, :n2]


# ------------------------------------------------------------------
# Kernel 2: the four descriptor projections fused into ONE grid step
#           (descriptor_dim zero-padded to 128 lanes on the host).
# ------------------------------------------------------------------
def _desc_proj_kernel(x_ref, w_ref, b_ref, o_ref):
    for gi in range(x_ref.shape[0]):          # static unroll over the 4 projections
        o_ref[gi] = (jnp.dot(x_ref[gi], w_ref[gi],
                             preferred_element_type=jnp.float32) + b_ref[gi])


def pallas_desc_proj(desc_stack, w_stack, b_stack):
    g, rows, dd = desc_stack.shape
    dm = w_stack.shape[-1]
    return pl.pallas_call(
        _desc_proj_kernel,
        out_shape=jax.ShapeDtypeStruct((g, rows, dm), jnp.float32),
        grid=(1,),
        in_specs=[
            pl.BlockSpec((g, rows, dd), lambda i: (0, 0, 0)),
            pl.BlockSpec((g, dd, dm), lambda i: (0, 0, 0)),
            pl.BlockSpec((g, 1, dm), lambda i: (0, 0, 0)),
        ],
        out_specs=pl.BlockSpec((g, rows, dm), lambda i: (0, 0, 0)),
    )(desc_stack, w_stack, b_stack)


# ------------------------------------------------------------------
# Kernel 3: full TransformerEncoder stack + masked-mean pooling + final FC.
#           grid=(batch_blocks,); layer loop in-kernel with resident weights.
# ------------------------------------------------------------------
def _encoder_stack_kernel(x_ref, m_ref,
                          wqkv_ref, bqkv_ref, wo_ref, bo_ref,
                          g1_ref, be1_ref, w1_ref, b1_ref, w2_ref, b2_ref,
                          g2_ref, be2_ref, wf_ref, bf_ref,
                          o_ref, *, nhead, head_dim, n_layers, b_blk, seq_len):
    d_model = nhead * head_dim
    rows = b_blk * seq_len

    x = x_ref[...].reshape(rows, d_model)                    # (B_blk*L, D) f32
    m = m_ref[0]                                             # (B_blk, L) 1/0 mask
    key_bias = jnp.where(m > 0.0, 0.0, -1e30).reshape(b_blk, 1, seq_len)

    def layer(l, x):
        xb = x.astype(jnp.bfloat16)
        # QKV on stacked rows fills the MXU M dimension (1/sqrt(hd) pre-folded into Q).
        qkv = (jnp.dot(xb, wqkv_ref[l], preferred_element_type=jnp.float32)
               + bqkv_ref[l])
        q = qkv[:, :d_model].reshape(b_blk, seq_len, d_model)
        k = qkv[:, d_model:2 * d_model].reshape(b_blk, seq_len, d_model)
        v = qkv[:, 2 * d_model:].reshape(b_blk, seq_len, d_model)

        # Per-head attention; ctx heads lane-concatenated so the output projection
        # is ONE full-K=128 matmul instead of 8 K=16 matmuls.
        ctx_heads = []
        for h in range(nhead):
            lo = h * head_dim
            qh = q[:, :, lo:lo + head_dim].astype(jnp.bfloat16)
            kh = k[:, :, lo:lo + head_dim].astype(jnp.bfloat16)
            vh = v[:, :, lo:lo + head_dim].astype(jnp.bfloat16)
            s = jnp.einsum('bqd,bkd->bqk', qh, kh,
                           preferred_element_type=jnp.float32) + key_bias
            s = s - jnp.max(s, axis=-1, keepdims=True)        # f32 softmax statistics
            p = jnp.exp(s)
            p = p * pl.reciprocal(jnp.sum(p, axis=-1, keepdims=True), approx=True)
            ctx_heads.append(jnp.einsum('bqk,bkd->bqd', p.astype(jnp.bfloat16), vh,
                                        preferred_element_type=jnp.float32))
        ctx = jnp.concatenate(ctx_heads, axis=-1).reshape(rows, d_model)
        attn = (jnp.dot(ctx.astype(jnp.bfloat16), wo_ref[l],
                        preferred_element_type=jnp.float32) + bo_ref[l])

        # Post-norm residual blocks (f32 statistics), ReLU FFN, dropout=identity.
        y = _layernorm(x + attn, g1_ref[l], be1_ref[l])
        h1 = jnp.maximum(
            jnp.dot(y.astype(jnp.bfloat16), w1_ref[l],
                    preferred_element_type=jnp.float32) + b1_ref[l], 0.0)
        ff = (jnp.dot(h1.astype(jnp.bfloat16), w2_ref[l],
                      preferred_element_type=jnp.float32) + b2_ref[l])
        return _layernorm(y + ff, g2_ref[l], be2_ref[l])

    x = lax.fori_loop(0, n_layers, layer, x, unroll=True)

    # Masked-mean pooling + final linear (exact divide; clamp guards empty samples).
    x3 = x.reshape(b_blk, seq_len, d_model)
    pooled = jnp.sum(x3 * m[:, :, None], axis=1)
    denom = jnp.maximum(jnp.sum(m, axis=-1, keepdims=True), 1.0)
    pooled = pooled / denom
    o_ref[0] = (jnp.dot(pooled.astype(jnp.bfloat16), wf_ref[...],
                        preferred_element_type=jnp.float32) + bf_ref[...])


def pallas_encoder_stack(seq, mask, pk, nhead):
    bsz, seq_len, d_model = seq.shape
    n_layers = pk["wqkv"].shape[0]
    head_dim = d_model // nhead
    ffn = pk["w1"].shape[-1]
    n_out_pad = pk["final_w"].shape[-1]

    # Sample blocking: raise MXU M (rows = b_blk*seq_len) toward 128-256, but keep
    # >= 2 grid steps whenever possible so v7x's two TensorCores both get work.
    b_blk = max(1, min(bsz, 256 // max(seq_len, 1)))
    if bsz >= 2:
        b_blk = min(b_blk, max(1, bsz // 2))
    n_bblk = pl.cdiv(bsz, b_blk)
    b_pad = n_bblk * b_blk
    if b_pad != bsz:
        seq = jnp.pad(seq, ((0, b_pad - bsz), (0, 0), (0, 0)))
        mask = jnp.pad(mask, ((0, b_pad - bsz), (0, 0)))
    mask3 = mask.reshape(n_bblk, b_blk, seq_len)

    def wspec(shape):     # layer-stacked, VMEM-resident (constant index_map)
        return pl.BlockSpec((n_layers,) + shape, lambda b: (0, 0, 0))

    out = pl.pallas_call(
        functools.partial(_encoder_stack_kernel, nhead=nhead, head_dim=head_dim,
                          n_layers=n_layers, b_blk=b_blk, seq_len=seq_len),
        out_shape=jax.ShapeDtypeStruct((n_bblk, b_blk, n_out_pad), jnp.float32),
        grid=(n_bblk,),
        in_specs=[
            pl.BlockSpec((b_blk, seq_len, d_model), lambda b: (b, 0, 0)),
            pl.BlockSpec((1, b_blk, seq_len), lambda b: (b, 0, 0)),
            wspec((d_model, 3 * d_model)), wspec((1, 3 * d_model)),
            wspec((d_model, d_model)), wspec((1, d_model)),
            wspec((1, d_model)), wspec((1, d_model)),
            wspec((d_model, ffn)), wspec((1, ffn)),
            wspec((ffn, d_model)), wspec((1, d_model)),
            wspec((1, d_model)), wspec((1, d_model)),
            pl.BlockSpec((d_model, n_out_pad), lambda b: (0, 0)),
            pl.BlockSpec((1, n_out_pad), lambda b: (0, 0)),
        ],
        out_specs=pl.BlockSpec((1, b_blk, n_out_pad), lambda b: (b, 0, 0)),
        compiler_params=pltpu.CompilerParams(dimension_semantics=("parallel",)),
    )(seq, mask3,
      pk["wqkv"], pk["bqkv"], pk["wo"], pk["bo"],
      pk["g1"], pk["be1"], pk["w1"], pk["b1"], pk["w2"], pk["b2"],
      pk["g2"], pk["be2"], pk["final_w"], pk["final_b"])
    return out.reshape(b_pad, n_out_pad)[:bsz]


# ------------------------------------------------------------------
# Glue: GCN normalization, parameter init / packing, forward
# ------------------------------------------------------------------
def gcn_norm_dense(edge_index, num_nodes):
    """A_hat = D^-1/2 (A + I) D^-1/2 ; edge_index = [src, dst] (PyG convention)."""
    loops = jnp.arange(num_nodes, dtype=jnp.int32)
    src = jnp.concatenate([edge_index[0], loops])
    dst = jnp.concatenate([edge_index[1], loops])
    a = jnp.zeros((num_nodes, num_nodes), jnp.float32).at[dst, src].add(1.0)
    deg = jnp.zeros((num_nodes,), jnp.float32).at[dst].add(1.0)
    dinv = jnp.where(deg > 0, deg ** -0.5, 0.0)
    return dinv[:, None] * a * dinv[None, :]


def init_linear(key, fin, fout, scale=0.05):
    kw, kb = jax.random.split(key)
    w = scale * jax.random.normal(kw, (fin, fout), jnp.float32)
    b = scale * jax.random.normal(kb, (1, fout), jnp.float32)
    return w, b


def init_params(key, f_pro, out_dim, desc_dim, d_model, ff, n_layers, n_output):
    keys = iter(jax.random.split(key, 64))
    p = {}
    p["gcn1_w"], p["gcn1_b"] = init_linear(next(keys), f_pro, f_pro)
    p["fc1_w"], p["fc1_b"] = init_linear(next(keys), f_pro, out_dim)
    p["gcn2_w"], p["gcn2_b"] = init_linear(next(keys), f_pro, f_pro)
    p["fc2_w"], p["fc2_b"] = init_linear(next(keys), f_pro, out_dim)
    p["np1_w"], p["np1_b"] = init_linear(next(keys), out_dim, d_model)
    p["np2_w"], p["np2_b"] = init_linear(next(keys), out_dim, d_model)
    for name in ("m1s", "m1f", "m2s", "m2f"):
        p[f"{name}_w"], p[f"{name}_b"] = init_linear(next(keys), desc_dim, d_model)
    layers = []
    for _ in range(n_layers):
        lp = {}
        lp["wqkv"], lp["bqkv"] = init_linear(next(keys), d_model, 3 * d_model)
        lp["wo"], lp["bo"] = init_linear(next(keys), d_model, d_model)
        lp["w1"], lp["b1"] = init_linear(next(keys), d_model, ff)
        lp["w2"], lp["b2"] = init_linear(next(keys), ff, d_model)
        lp["g1"] = jnp.ones((1, d_model), jnp.float32)
        lp["be1"] = jnp.zeros((1, d_model), jnp.float32)
        lp["g2"] = jnp.ones((1, d_model), jnp.float32)
        lp["be2"] = jnp.zeros((1, d_model), jnp.float32)
        layers.append(lp)
    p["layers"] = layers
    p["final_w"], p["final_b"] = init_linear(next(keys), d_model, n_output)
    return p


def pack_params(p, nhead):
    """Stack per-layer / per-branch weights, fold the attention scale, pre-cast to bf16."""
    bf = jnp.bfloat16
    pk = {}
    pk["gcn_wg"] = jnp.stack([p["gcn1_w"], p["gcn2_w"]]).astype(bf)
    pk["gcn_bg"] = jnp.stack([p["gcn1_b"], p["gcn2_b"]])
    pk["gcn_wf"] = jnp.stack([p["fc1_w"], p["fc2_w"]]).astype(bf)
    pk["gcn_bf"] = jnp.stack([p["fc1_b"], p["fc2_b"]])
    pk["gcn_wn"] = jnp.stack([p["np1_w"], p["np2_w"]]).astype(bf)
    pk["gcn_bn"] = jnp.stack([p["np1_b"], p["np2_b"]])

    # Descriptor projections: zero-pad descriptor_dim up to a 128-lane multiple.
    dd = p["m1s_w"].shape[0]
    dd_pad = ((dd + 127) // 128) * 128
    desc_w = jnp.stack([p["m1s_w"], p["m1f_w"], p["m2s_w"], p["m2f_w"]])
    pk["desc_w"] = jnp.pad(desc_w, ((0, 0), (0, dd_pad - dd), (0, 0))).astype(bf)
    pk["desc_b"] = jnp.stack([p["m1s_b"], p["m1f_b"], p["m2s_b"], p["m2f_b"]])
    pk["dd_pad"] = dd_pad

    # Encoder layers: fold 1/sqrt(head_dim) into the Q columns of wqkv / bqkv.
    d_model = p["layers"][0]["wqkv"].shape[0]
    head_dim = d_model // nhead
    scale = 1.0 / math.sqrt(head_dim)
    wqkv, bqkv = [], []
    for lp in p["layers"]:
        wqkv.append(lp["wqkv"].at[:, :d_model].multiply(scale))
        bqkv.append(lp["bqkv"].at[:, :d_model].multiply(scale))
    pk["wqkv"] = jnp.stack(wqkv).astype(bf)
    pk["bqkv"] = jnp.stack(bqkv)
    for name in ("wo", "w1", "w2"):
        pk[name] = jnp.stack([lp[name] for lp in p["layers"]]).astype(bf)
    for name in ("bo", "b1", "b2", "g1", "be1", "g2", "be2"):
        pk[name] = jnp.stack([lp[name] for lp in p["layers"]])

    n_out = p["final_w"].shape[1]
    n_out_pad = ((n_out + 127) // 128) * 128          # lane-dense output slab
    pk["final_w"] = jnp.pad(p["final_w"], ((0, 0), (0, n_out_pad - n_out))).astype(bf)
    pk["final_b"] = jnp.pad(p["final_b"], ((0, 0), (0, n_out_pad - n_out)))
    pk["n_out"] = n_out
    return pk


def forward(pk, nhead,
            pro1_x, pro1_adj, pro1_counts,
            pro2_x, pro2_adj, pro2_counts,
            mas1_s, mas1_f, mas2_s, mas2_f,
            len1_s, len1_f, len2_s, len2_f):
    # Fused GCN branches (the reference module multiplies their output by 0 before the
    # sequence concat; we still run the fused chain to mirror its compute).
    p1, p2 = pallas_gcn_branches(pro1_adj, pro1_x, pro2_adj, pro2_x, pk)

    # Fused descriptor projections: one pallas_call, one grid step (padded lanes/rows).
    bsz, mpad, dd = mas1_s.shape
    rows = bsz * mpad
    rows_pad = ((rows + 15) // 16) * 16
    dd_pad = pk["dd_pad"]
    desc_stack = jnp.stack([mas1_s, mas1_f, mas2_s, mas2_f]).reshape(4, rows, dd)
    desc_stack = jnp.pad(desc_stack,
                         ((0, 0), (0, rows_pad - rows), (0, dd_pad - dd))
                         ).astype(jnp.bfloat16)
    desc_proj = pallas_desc_proj(desc_stack, pk["desc_w"], pk["desc_b"])
    d_model = desc_proj.shape[-1]
    desc_flat = desc_proj[:, :rows, :].reshape(4 * rows, d_model)

    # Per-sample sequence assembly via a single static gather (lengths are host ints).
    # TODO(synk): PyTorch derives lengths via .item(); data-dependent lengths would need
    # a scalar-prefetch gather kernel instead of host-built indices.
    c1, c2 = list(pro1_counts), list(pro2_counts)
    tot = [c1[i] + c2[i] + len1_s[i] + len1_f[i] + len2_s[i] + len2_f[i]
           for i in range(bsz)]
    max_len = max(16, ((max(tot) + 15) // 16) * 16)   # sublane / bf16-pack aligned
    gather_idx = np.zeros((bsz, max_len), np.int32)
    valid = np.zeros((bsz, max_len), np.float32)
    mask_np = np.zeros((bsz, max_len), np.float32)
    for i in range(bsz):
        mask_np[i, :tot[i]] = 1.0
        pos = c1[i] + c2[i]                 # rows for (pro1*0, pro2*0) stay zero
        for g, ln in enumerate((len1_s[i], len1_f[i], len2_s[i], len2_f[i])):
            for r in range(ln):
                gather_idx[i, pos] = g * rows + i * mpad + r
                valid[i, pos] = 1.0
                pos += 1

    seq_batch = (jnp.asarray(valid)[:, :, None]
                 * jnp.take(desc_flat, jnp.asarray(gather_idx), axis=0))
    # Faithful `pro_nodes * 0` dependence (also keeps the fused GCN kernel live under jit).
    seq_batch = seq_batch + 0.0 * (jnp.sum(p1) + jnp.sum(p2))
    attn_mask = jnp.asarray(mask_np)

    # Fused encoder stack + pooling + final linear, one pallas_call.
    out = pallas_encoder_stack(seq_batch, attn_mask, pk, nhead)
    return out[:, :pk["n_out"]]


# ------------------------------------------------------------------
# Driver
# ------------------------------------------------------------------
def ring_edges(counts):
    src, dst = [], []
    off = 0
    for c in counts:
        for j in range(c):
            a = off + j
            b = off + (j + 1) % c
            src += [a, b]
            dst += [b, a]
        off += c
    return jnp.array([src, dst], dtype=jnp.int32)


if __name__ == "__main__":
    key = jax.random.PRNGKey(0)

    # Small shapes consistent with the module's __init__ structure
    F_PRO, OUT_DIM, D_MODEL, NHEAD = 256, 128, 128, 8
    FF, N_LAYERS, DESC_DIM, N_OUT = 256, 2, 80, 1
    B = 2
    MAS_PAD = 6

    pro1_counts = [8, 6]
    pro2_counts = [8, 6]
    len1_s, len1_f, len2_s, len2_f = [4, 3], [4, 3], [4, 3], [4, 3]

    keys = iter(jax.random.split(key, 16))
    raw_params = init_params(next(keys), F_PRO, OUT_DIM, DESC_DIM, D_MODEL,
                             FF, N_LAYERS, N_OUT)
    params = pack_params(raw_params, NHEAD)

    n1 = sum(pro1_counts)
    n2 = sum(pro2_counts)
    pro1_x = jax.random.normal(next(keys), (n1, F_PRO), jnp.float32)
    pro2_x = jax.random.normal(next(keys), (n2, F_PRO), jnp.float32)
    pro1_adj = gcn_norm_dense(ring_edges(pro1_counts), n1)
    pro2_adj = gcn_norm_dense(ring_edges(pro2_counts), n2)

    mas1_s = jax.random.normal(next(keys), (B, MAS_PAD, DESC_DIM), jnp.float32)
    mas1_f = jax.random.normal(next(keys), (B, MAS_PAD, DESC_DIM), jnp.float32)
    mas2_s = jax.random.normal(next(keys), (B, MAS_PAD, DESC_DIM), jnp.float32)
    mas2_f = jax.random.normal(next(keys), (B, MAS_PAD, DESC_DIM), jnp.float32)

    out = forward(params, NHEAD,
                  pro1_x, pro1_adj, pro1_counts,
                  pro2_x, pro2_adj, pro2_counts,
                  mas1_s, mas1_f, mas2_s, mas2_f,
                  len1_s, len1_f, len2_s, len2_f)
    out = jax.block_until_ready(out)
    assert out.shape == (B, N_OUT) and bool(jnp.all(jnp.isfinite(out)))
    print("KERNEL_OK")
</pallas_src>

<mosaic_0001>
module attributes {stable_mosaic.version = 11 : i64} {
  func.func @_gcn_chain_kernel(%arg0: i32, %arg1: memref<1x16x16xbf16, #tpu.memory_space<vmem>>, %arg2: memref<1x16x256xbf16, #tpu.memory_space<vmem>>, %arg3: memref<1x256x256xbf16, #tpu.memory_space<vmem>>, %arg4: memref<1x1x256xf32, #tpu.memory_space<vmem>>, %arg5: memref<1x256x128xbf16, #tpu.memory_space<vmem>>, %arg6: memref<1x1x128xf32, #tpu.memory_space<vmem>>, %arg7: memref<1x128x128xbf16, #tpu.memory_space<vmem>>, %arg8: memref<1x1x128xf32, #tpu.memory_space<vmem>>, %arg9: memref<1x16x128xf32, #tpu.memory_space<vmem>>) attributes {dimension_semantics = [#tpu.dimension_semantics<parallel>], iteration_bounds = array<i64: 2>, scalar_prefetch = 0 : i64, scratch_operands = 0 : i64, tpu.core_type = #tpu.core_type<tc>, window_params = [{transform_indices = @transform_0, window_bounds = array<i64: 1, 16, 16>}, {transform_indices = @transform_1, window_bounds = array<i64: 1, 16, 256>}, {transform_indices = @transform_2, window_bounds = array<i64: 1, 256, 256>}, {transform_indices = @transform_3, window_bounds = array<i64: 1, 1, 256>}, {transform_indices = @transform_4, window_bounds = array<i64: 1, 256, 128>}, {transform_indices = @transform_5, window_bounds = array<i64: 1, 1, 128>}, {transform_indices = @transform_6, window_bounds = array<i64: 1, 128, 128>}, {transform_indices = @transform_7, window_bounds = array<i64: 1, 1, 128>}, {transform_indices = @transform_8, window_bounds = array<i64: 1, 16, 128>}]} {
    %c0 = arith.constant 0 : index
    %c0_0 = arith.constant 0 : index
    %c0_1 = arith.constant 0 : index
    %0 = vector.load %arg1[%c0, %c0_0, %c0_1] : memref<1x16x16xbf16, #tpu.memory_space<vmem>>, vector<1x16x16xbf16>
    %1 = vector.shape_cast %0 : vector<1x16x16xbf16> to vector<16x16xbf16>
    %c0_2 = arith.constant 0 : index
    %c0_3 = arith.constant 0 : index
    %c0_4 = arith.constant 0 : index
    %2 = vector.load %arg2[%c0_2, %c0_3, %c0_4] : memref<1x16x256xbf16, #tpu.memory_space<vmem>>, vector<1x16x256xbf16>
    %3 = vector.shape_cast %2 : vector<1x16x256xbf16> to vector<16x256xbf16>
    %c0_5 = arith.constant 0 : index
    %c0_6 = arith.constant 0 : index
    %c0_7 = arith.constant 0 : index
    %4 = vector.load %arg3[%c0_5, %c0_6, %c0_7] : memref<1x256x256xbf16, #tpu.memory_space<vmem>>, vector<1x256x256xbf16>
    %5 = vector.shape_cast %4 : vector<1x256x256xbf16> to vector<256x256xbf16>
    %cst = arith.constant dense<0.000000e+00> : vector<16x256xf32>
    %6 = tpu.matmul %3, %5, %cst {dimension_numbers = #tpu.dot_dimension_numbers<[1], [0], [0], [1], [0, 0, 1, 1], [], []>} : vector<16x256xbf16>, vector<256x256xbf16>, vector<16x256xf32> -> vector<16x256xf32>
    %7 = arith.truncf %6 : vector<16x256xf32> to vector<16x256xbf16>
    %cst_8 = arith.constant dense<0.000000e+00> : vector<16x256xf32>
    %8 = tpu.matmul %1, %7, %cst_8 {dimension_numbers = #tpu.dot_dimension_numbers<[1], [0], [0], [1], [0, 0, 1, 1], [], []>} : vector<16x16xbf16>, vector<16x256xbf16>, vector<16x256xf32> -> vector<16x256xf32>
    %c0_9 = arith.constant 0 : index
    %c0_10 = arith.constant 0 : index
    %c0_11 = arith.constant 0 : index
    %9 = vector.load %arg4[%c0_9, %c0_10, %c0_11] : memref<1x1x256xf32, #tpu.memory_space<vmem>>, vector<1x1x256xf32>
    %10 = vector.shape_cast %9 : vector<1x1x256xf32> to vector<1x256xf32>
    %11 = vector.broadcast %10 : vector<1x256xf32> to vector<16x256xf32>
    %12 = arith.addf %8, %11 : vector<16x256xf32>
    %cst_12 = arith.constant 0.000000e+00 : f32
    %13 = vector.broadcast %cst_12 : f32 to vector<16x256xf32>
    %14 = arith.cmpf oge, %12, %13 : vector<16x256xf32>
    %cst_13 = arith.constant 0.00999999977 : f32
    %15 = vector.broadcast %cst_13 : f32 to vector<16x256xf32>
    %16 = arith.mulf %15, %12 : vector<16x256xf32>
    %17 = arith.select %14, %12, %16 : vector<16x256xi1>, vector<16x256xf32>
    %18 = arith.truncf %17 : vector<16x256xf32> to vector<16x256xbf16>
    %c0_14 = arith.constant 0 : index
    %c0_15 = arith.constant 0 : index
    %c0_16 = arith.constant 0 : index
    %19 = vector.load %arg5[%c0_14, %c0_15, %c0_16] : memref<1x256x128xbf16, #tpu.memory_space<vmem>>, vector<1x256x128xbf16>
    %20 = vector.shape_cast %19 : vector<1x256x128xbf16> to vector<256x128xbf16>
    %cst_17 = arith.constant dense<0.000000e+00> : vector<16x128xf32>
    %21 = tpu.matmul %18, %20, %cst_17 {dimension_numbers = #tpu.dot_dimension_numbers<[1], [0], [0], [1], [0, 0, 1, 1], [], []>} : vector<16x256xbf16>, vector<256x128xbf16>, vector<16x128xf32> -> vector<16x128xf32>
    %c0_18 = arith.constant 0 : index
    %c0_19 = arith.constant 0 : index
    %c0_20 = arith.constant 0 : index
    %22 = vector.load %arg6[%c0_18, %c0_19, %c0_20] : memref<1x1x128xf32, #tpu.memory_space<vmem>>, vector<1x1x128xf32>
    %23 = vector.shape_cast %22 : vector<1x1x128xf32> to vector<1x128xf32>
    %24 = vector.broadcast %23 : vector<1x128xf32> to vector<16x128xf32>
    %25 = arith.addf %21, %24 : vector<16x128xf32>
    %cst_21 = arith.constant 0.000000e+00 : f32
    %26 = vector.broadcast %cst_21 : f32 to vector<16x128xf32>
    %27 = arith.cmpf oge, %25, %26 : vector<16x128xf32>
    %cst_22 = arith.constant 0.00999999977 : f32
    %28 = vector.broadcast %cst_22 : f32 to vector<16x128xf32>
    %29 = arith.mulf %28, %25 : vector<16x128xf32>
    %30 = arith.select %27, %25, %29 : vector<16x128xi1>, vector<16x128xf32>
    %31 = arith.truncf %30 : vector<16x128xf32> to vector<16x128xbf16>
    %c0_23 = arith.constant 0 : index
    %c0_24 = arith.constant 0 : index
    %c0_25 = arith.constant 0 : index
    %32 = vector.load %arg7[%c0_23, %c0_24, %c0_25] : memref<1x128x128xbf16, #tpu.memory_space<vmem>>, vector<1x128x128xbf16>
    %33 = vector.shape_cast %32 : vector<1x128x128xbf16> to vector<128x128xbf16>
    %cst_26 = arith.constant dense<0.000000e+00> : vector<16x128xf32>
    %34 = tpu.matmul %31, %33, %cst_26 {dimension_numbers = #tpu.dot_dimension_numbers<[1], [0], [0], [1], [0, 0, 1, 1], [], []>} : vector<16x128xbf16>, vector<128x128xbf16>, vector<16x128xf32> -> vector<16x128xf32>
    %c0_27 = arith.constant 0 : index
    %c0_28 = arith.constant 0 : index
    %c0_29 = arith.constant 0 : index
    %35 = vector.load %arg8[%c0_27, %c0_28, %c0_29] : memref<1x1x128xf32, #tpu.memory_space<vmem>>, vector<1x1x128xf32>
    %36 = vector.shape_cast %35 : vector<1x1x128xf32> to vector<1x128xf32>
    %37 = vector.broadcast %36 : vector<1x128xf32> to vector<16x128xf32>
    %38 = arith.addf %34, %37 : vector<16x128xf32>
    %c0_30 = arith.constant 0 : index
    %c0_31 = arith.constant 0 : index
    %c0_32 = arith.constant 0 : index
    %39 = vector.load %arg9[%c0_30, %c0_31, %c0_32] : memref<1x16x128xf32, #tpu.memory_space<vmem>>, vector<1x16x128xf32>
    %40 = vector.shape_cast %39 : vector<1x16x128xf32> to vector<16x128xf32>
    %41 = vector.shape_cast %38 : vector<16x128xf32> to vector<1x16x128xf32>
    tpu.vector_store %arg9[%c0_30, %c0_31, %c0_32], %41 {strides = array<i32>} : memref<1x16x128xf32, #tpu.memory_space<vmem>>, vector<1x16x128xf32>,
    return
  }
  func.func @transform_0(%arg0: i32) -> (i32, i32, i32) {
    %c0_i32 = arith.constant 0 : i32
    %c0_i32_0 = arith.constant 0 : i32
    %c0_i32_1 = arith.constant 0 : i32
    return %arg0, %c0_i32, %c0_i32_0 : i32, i32, i32
  }
  func.func @transform_1(%arg0: i32) -> (i32, i32, i32) {
    %c0_i32 = arith.constant 0 : i32
    %c0_i32_0 = arith.constant 0 : i32
    %c0_i32_1 = arith.constant 0 : i32
    return %arg0, %c0_i32, %c0_i32_0 : i32, i32, i32
  }
  func.func @transform_2(%arg0: i32) -> (i32, i32, i32) {
    %c0_i32 = arith.constant 0 : i32
    %c0_i32_0 = arith.constant 0 : i32
    %c0_i32_1 = arith.constant 0 : i32
    return %arg0, %c0_i32, %c0_i32_0 : i32, i32, i32
  }
  func.func @transform_3(%arg0: i32) -> (i32, i32, i32) {
    %c0_i32 = arith.constant 0 : i32
    %c0_i32_0 = arith.constant 0 : i32
    %c0_i32_1 = arith.constant 0 : i32
    return %arg0, %c0_i32, %c0_i32_0 : i32, i32, i32
  }
  func.func @transform_4(%arg0: i32) -> (i32, i32, i32) {
    %c0_i32 = arith.constant 0 : i32
    %c0_i32_0 = arith.constant 0 : i32
    %c0_i32_1 = arith.constant 0 : i32
    return %arg0, %c0_i32, %c0_i32_0 : i32, i32, i32
  }
  func.func @transform_5(%arg0: i32) -> (i32, i32, i32) {
    %c0_i32 = arith.constant 0 : i32
    %c0_i32_0 = arith.constant 0 : i32
    %c0_i32_1 = arith.constant 0 : i32
    return %arg0, %c0_i32, %c0_i32_0 : i32, i32, i32
  }
  func.func @transform_6(%arg0: i32) -> (i32, i32, i32) {
    %c0_i32 = arith.constant 0 : i32
    %c0_i32_0 = arith.constant 0 : i32
    %c0_i32_1 = arith.constant 0 : i32
    return %arg0, %c0_i32, %c0_i32_0 : i32, i32, i32
  }
  func.func @transform_7(%arg0: i32) -> (i32, i32, i32) {
    %c0_i32 = arith.constant 0 : i32
    %c0_i32_0 = arith.constant 0 : i32
    %c0_i32_1 = arith.constant 0 : i32
    return %arg0, %c0_i32, %c0_i32_0 : i32, i32, i32
  }
  func.func @transform_8(%arg0: i32) -> (i32, i32, i32) {
    %c0_i32 = arith.constant 0 : i32
    %c0_i32_0 = arith.constant 0 : i32
    %c0_i32_1 = arith.constant 0 : i32
    return %arg0, %c0_i32, %c0_i32_0 : i32, i32, i32
  }
}

</mosaic_0001>

<bundles_post_ra>
// kernel: tpu_custom_call.1
= control target key start
LH: loop header
LB: loop body
LE: loop exit
PB: predicated region body
PF: predicated region fallthrough
CT: control target
= control target key end

     0   :  { %s2460_s0 = inlined_call_operand.hbm [shape: bf16[2,16,16], index: 0, kind: input, shape index: {}]   ;;  %s2461_s1 = inlined_call_operand.hbm [shape: bf16[2,16,256], index: 1, kind: input, shape index: {}]   ;;  %s2462_s2 = inlined_call_operand.hbm [shape: bf16[2,256,256], index: 2, kind: input, shape index: {}]   ;;  %s2463_s3 = inlined_call_operand.hbm [shape: f32[2,1,256], index: 3, kind: input, shape index: {}]   ;;  %s2464_s4 = inlined_call_operand.hbm [shape: bf16[2,256,128], index: 4, kind: input, shape index: {}]   ;;  %s2465_s5 = inlined_call_operand.vmem [shape: f32[2,1,128], index: 5, kind: input, shape index: {}]   ;;  %s2466_s6 = inlined_call_operand.hbm [shape: bf16[2,128,128], index: 6, kind: input, shape index: {}]   ;;  %s2467_s7 = inlined_call_operand.vmem [shape: f32[2,1,128], index: 7, kind: input, shape index: {}]   ;;  %s2468_s8 = inlined_call_operand.hbm [shape: f32[2,16,128], index: 8, kind: output, shape index: {}]  }
   0x1   :  { %2482 = sst [smem:[#allocation25_spill]] %s2460_s0 }
   0x2   :  { %2483 = sst [smem:[#allocation26_spill]] %s2461_s1 }
   0x3   :  { %2484 = sst [smem:[#allocation27_spill]] %s2463_s3 }
   0x4   :  { %2485 = sst [smem:[#allocation28_spill]] %s2468_s8 }
   0x5   :  { %13 = vsyncpa [#allocation3], 0 }
   0x6   :  { %15 = vsyncpa [#allocation3 + $0x1], 0 }
   0x7   :  { %16 = vsyncpa [#allocation6], 0 }
   0x8   :  { %18 = vsyncpa [#allocation6 + $0x1], 0 }
   0x9   :  { %19 = vsyncpa [#allocation9], 0 }
   0xa   :  { %21 = vsyncpa [#allocation9 + $0x1], 0 }
   0xb   :  { %22 = vsyncpa [#allocation12], 0 }
   0xc   :  { %24 = vsyncpa [#allocation12 + $0x1], 0 }
   0xd   :  { %25 = vsyncpa [#allocation4], 0 }
   0xe   :  { %27 = vsyncpa [#allocation4 + $0x1], 0  ;;  %s2070_s27 = smov 0   ;;  %s2072_s28 = smov 0  }
   0xf   :  { %s2074_s29 = smov 0   ;;  %s2076_s30 = smov 0  }
  0x10 LB: > { %2486 = sst [smem:[#allocation19_spill]] %s2005_s27  ;;  %s2091_s9 = sadd.s32 4294967295, %s2017_s30   ;;  %s2017_s30 = sphi %s2076_s30, %s2509_s30   ;;  %s2013_s29 = sphi %s2074_s29, %s2511_s29   ;;  %s2009_s28 = sphi %s2072_s28, %s2513_s28   ;;  %s2005_s27 = sphi %s2070_s27, %s2512_s27  }
  0x11   : > { %2487 = sst [smem:[#allocation20_spill]] %s2013_s29  ;;  %s1344_s10 = sadd.s32 4294967294, %s2017_s30  }
  0x12   : > { %s2095_s11 = sadd.s32 1, %s2017_s30   ;;  %s40_s12 = sadd.s32 1, %s2013_s29 }
  0x13   : > { %2488 = sst [smem:[#allocation21_spill]] %s2095_s11  ;;  %s37_s13 = ssub.s32 %s2017_s30, %s2095_s11 }
  0x14   : > { %p47_p0 = scmp.ne.s32.totalorder %s2013_s29, %s2009_s28  ;;  %p38_p1 = scmp.eq.s32.totalorder %s37_s13, 0 }
  0x15   : > { %p48_p2 = scmp.eq.s32.totalorder %s2017_s30, 0  ;;  %p53_p3 = scmp.ne.s32.totalorder %s2009_s28, %s2005_s27 }
  0x16   : > { %p54_p4 = scmp.eq.s32.totalorder %s2091_s9, 0  ;;  %p259_p7 = scmp.eq.s32.totalorder %s2091_s9, 1 }
  0x17   : > { %s2107_s14 = scalar_select %p38_p1, %s2013_s29, %s40_s12  }
  0x18   : > { %p49_p5 = por %p48_p2, %p47_p0  ;;  %p2109_p6 = por %p54_p4, %p53_p3 }
  0x19   : > { %2489 = sst [smem:[#allocation22_spill]] %s2107_s14  ;;  %p265_p8 = scmp.eq.s32.totalorder %s1344_s10, 1 }
  0x1a   : > { %p1346_p9 = scmp.ge.s32.totalorder %s2017_s30, 2  ;;  %p1717_p10 = scmp.lt.s32.totalorder %s2017_s30, 2 }
  0x1b   : > { %p2116_p11 = por %p259_p7, %p47_p0  ;;  %p2120_p12 = por %p265_p8, %p53_p3 }
  0x1c   : > { %s2125_s18 = sand.u32 1, %s2013_s29   ;;  %p2127_p13 = pnand %p1717_p10, %p49_p5 }
  0x1d   : > { %s2491_s16 = scalar_select %p2116_p11, 1, 0 }
  0x1e   : > { %s2493_s17 = scalar_select %p2120_p12, 1, 0 }
  0x1f   : > { %2492 = sst [smem:[#allocation23_spill]] %s2491_s16  ;;  %s2472_s20 = sand.u32 1, %s2017_s30  }
  0x20   : > { %2494 = sst [smem:[#allocation24_spill]] %s2493_s17  ;;  %s1350_s21 = sshll.u32 %s2125_s18, 4 }
  0x21   : > { %s1616_s22 = sshll.u32 %s2017_s30, 4  ;;  %s2496_s1 = sld [smem:[#allocation26_spill]] }
  0x22   : > { %s311_s26 = scalar_lea.vmem [#allocation5], %s1350_s21  ;;  %p1364_p0 = scmp.ge.s32.totalorder %s2017_s30, 1 }
  0x23   : > { %s319_s10 = sshll.u32 %s311_s26, 4  ;;  %s2140_s13 = scalar_lea.sflag [#allocation6], %s2472_s20  ;;  %s320_s10 = int_to_ptr.vmem [resolvable:$true] %s319_s10 }
  0x24   : > { %p2144_p2 = pneg %p2127_p13 }
  0x27   : > { %s316_s25 = scalar_lea.hbm %s2496_s1, %s1616_s22  ;;  %s1766_s23 = scalar_lea.hbm %s2496_s1, 32 }
  0x28   : > { %s317_s12 = sshll.u32 %s316_s25, 4  ;;  %s318_s12 = int_to_ptr.hbm [resolvable:$true] %s317_s12 }
  0x29   : > { %s1759_s14 = sshra.s32 %s318_s12, 4  ;;  %s1760_s14 = int_to_ptr.hbm [resolvable:$true] %s1759_s14 }
  0x2a   : > { %s1761_s29 = scalar_lea.hbm %s1760_s14, 16  ;;  %p1767_p5 = scmp.lt.s32.totalorder %s1760_s14, %s2496_s1 }
  0x2b   : > { %p1762_p1 = scmp.ne.s32.totalorder %s1760_s14, %s1761_s29  ;;  %p1768_p7 = scmp.lt.s32.totalorder %s1766_s23, %s1761_s29 }
  0x2d   : > { %p1764_p3 = pnand %p2144_p2, %p1762_p1  ;;  %p1769_p8 = por %p1768_p7, %p1767_p5 }
  0x2f   : > { %p1765_p4 = pneg %p1764_p3 }
  0x31   : > { %p1770_p10 = pnand %p1769_p8, %p1765_p4 }
  0x33   : > { %1773 = shalt.err (!%p1770_p10)
}
  0x34   : > { %s2475_s26 = smov 128   ;;  %s2476_s20 = smov 8  }
  0x35   : > { %1700 = dma.hbm_to_vmem [thread:$0]  (!%p2127_p13), %s318_s12, 256, %s320_s10, %s2140_s13, %s2475_s26, %s2475_s26, %s2476_s20  }
  0x36   : > { %p424_p1 = scmp.lt.s32.totalorder %s2017_s30, 3  ;;  %s1356_s29 = sshll.u32 %s2125_s18, 1 }
  0x37   : > { %s1357_s14 = sshll.u32 %s2017_s30, 1  ;;  %s2499_s3 = sld [smem:[#allocation27_spill]] }
  0x38   : > { %p2167_p3 = pnand %p1364_p0, %p424_p1  ;;  %s355_s25 = scalar_lea.vmem [#allocation8], %s1356_s29 }
  0x39   : > { %s363_s1 = sshll.u32 %s355_s25, 4  ;;  %s2500_s27 = sand.u32 1, %s2017_s30   ;;  %s364_s1 = int_to_ptr.vmem [resolvable:$true] %s363_s1 }
  0x3a   : > { %s2176_s10 = scalar_lea.sflag [#allocation9], %s2500_s27 }
  0x3d   : > { %s359_s24 = scalar_lea.hbm %s2499_s3, %s1357_s14  ;;  %s1796_s22 = scalar_lea.hbm %s2499_s3, 4 }
  0x3e   : > { %s361_s17 = sshll.u32 %s359_s24, 4  ;;  %s362_s17 = int_to_ptr.hbm [resolvable:$true] %s361_s17 }
  0x3f   : > { %s1789_s12 = sshra.s32 %s362_s17, 4  ;;  %s1790_s12 = int_to_ptr.hbm [resolvable:$true] %s1789_s12 }
  0x40   : > { %s1791_s26 = scalar_lea.hbm %s1790_s12, 2  ;;  %p1797_p7 = scmp.lt.s32.totalorder %s1790_s12, %s2499_s3 }
  0x41   : > { %p1792_p4 = scmp.ne.s32.totalorder %s1790_s12, %s1791_s26  ;;  %p1798_p8 = scmp.lt.s32.totalorder %s1796_s22, %s1791_s26 }
  0x43   : > { %p1794_p0 = pnand %p1792_p4, %p2144_p2  ;;  %p1799_p10 = por %p1798_p8, %p1797_p7 }
  0x45   : > { %p1795_p5 = pneg %p1794_p0 }
  0x47   : > { %p1800_p1 = pnand %p1799_p10, %p1795_p5 }
  0x49   : > { %1803 = shalt.err (!%p1800_p1)
}
  0x4a   : > { %1706 = dma.hbm_to_vmem [thread:$0]  (!%p2127_p13), %s362_s17, 32, %s364_s1, %s2176_s10  }
  0x4b   : > { %s1347_s27 = sshll.u32 %s2125_s18, 3  ;;  %s1615_s23 = sshll.u32 %s2017_s30, 3 }
  0x4c   : > { %s2501_s0 = sld [smem:[#allocation25_spill]]  ;;  %s289_s12 = scalar_lea.vmem [#allocation2], %s1347_s27 }
  0x4d   : > { %s297_s26 = sshll.u32 %s289_s12, 4  ;;  %s286_s22 = scalar_lea.sflag [#allocation3], %s2125_s18  ;;  %s298_s26 = int_to_ptr.vmem [resolvable:$true] %s297_s26 }
  0x52   : > { %s294_s24 = scalar_lea.hbm %s2501_s0, %s1615_s23  ;;  %s1826_s3 = scalar_lea.hbm %s2501_s0, 16 }
  0x53   : > { %s295_s25 = sshll.u32 %s294_s24, 4  ;;  %s296_s25 = int_to_ptr.hbm [resolvable:$true] %s295_s25 }
  0x54   : > { %s1819_s14 = sshra.s32 %s296_s25, 4  ;;  %s1820_s14 = int_to_ptr.hbm [resolvable:$true] %s1819_s14 }
  0x55   : > { %s1821_s29 = scalar_lea.hbm %s1820_s14, 8  ;;  %p1827_p7 = scmp.lt.s32.totalorder %s1820_s14, %s2501_s0 }
  0x56   : > { %p1822_p4 = scmp.ne.s32.totalorder %s1820_s14, %s1821_s29  ;;  %p1828_p8 = scmp.lt.s32.totalorder %s1826_s3, %s1821_s29 }
  0x58   : > { %p1824_p0 = pnand %p1822_p4, %p2144_p2  ;;  %p1829_p10 = por %p1828_p8, %p1827_p7 }
  0x5a   : > { %p1825_p5 = pneg %p1824_p0 }
  0x5c   : > { %p1830_p1 = pnand %p1829_p10, %p1825_p5 }
  0x5e   : > { %1833 = shalt.err (!%p1830_p1)
}
  0x5f   : > { %s2480_s27 = smov 64   ;;  %s2022_s23 = smov 4  }
  0x60   : > { %1697 = dma.hbm_to_vmem [thread:$0]  (!%p2127_p13), %s296_s25, 128, %s298_s26, %s286_s22, %s2480_s27, %s2480_s27, %s2022_s23  }
  0x61   : > { %s1353_s20 = sshll.u32 %s2125_s18, 8  ;;  %s1617_s24 = sshll.u32 %s2017_s30, 8 }
  0x62   : > { %s338_s3 = scalar_lea.hbm %s2462_s2, %s1617_s24  ;;  %s333_s29 = scalar_lea.vmem [#allocation7], %s1353_s20 }
  0x63   : > { %s339_s14 = sshll.u32 %s338_s3, 4  ;;  %s341_s1 = sshll.u32 %s333_s29, 4  ;;  %s340_s14 = int_to_ptr.hbm [resolvable:$true] %s339_s14  ;;  %s342_s1 = int_to_ptr.vmem [resolvable:$true] %s341_s1 }
  0x64   : > { %s1849_s17 = sshra.s32 %s340_s14, 4  ;;  %s1856_s26 = scalar_lea.hbm %s2462_s2, 512  ;;  %s1850_s17 = int_to_ptr.hbm [resolvable:$true] %s1849_s17 }
  0x65   : > { %s1851_s16 = scalar_lea.hbm %s1850_s17, 256  ;;  %p1857_p7 = scmp.lt.s32.totalorder %s1850_s17, %s2462_s2 }
  0x66   : > { %p1852_p4 = scmp.ne.s32.totalorder %s1850_s17, %s1851_s16  ;;  %p1858_p8 = scmp.lt.s32.totalorder %s1856_s26, %s1851_s16 }
  0x68   : > { %p1854_p0 = pnand %p1852_p4, %p2144_p2  ;;  %p1859_p10 = por %p1858_p8, %p1857_p7 }
  0x6a   : > { %p1855_p5 = pneg %p1854_p0 }
  0x6c   : > { %p1860_p1 = pnand %p1859_p10, %p1855_p5 }
  0x6e   : > { %1863 = shalt.err (!%p1860_p1)
}
  0x6f   : > { %s2502_s20 = smov 8   ;;  %s2503_s24 = smov 128  }
  0x70   : > { %1703 = dma.hbm_to_vmem [thread:$0]  (!%p2127_p13), %s340_s14, 4096, %s342_s1, %s2140_s13, %s2503_s24, %s2503_s24, %s2502_s20  }
  0x71   : > { %s1358_s0 = sshll.u32 %s2125_s18, 7  ;;  %s1618_s12 = sshll.u32 %s2017_s30, 7 }
  0x72   : > { %s379_s27 = scalar_lea.hbm %s2464_s4, %s1618_s12  ;;  %s374_s17 = scalar_lea.vmem [#allocation10], %s1358_s0 }
  0x73   : > { %s380_s29 = sshll.u32 %s379_s27, 4  ;;  %s382_s16 = sshll.u32 %s374_s17, 4  ;;  %s381_s29 = int_to_ptr.hbm [resolvable:$true] %s380_s29  ;;  %s383_s16 = int_to_ptr.vmem [resolvable:$true] %s382_s16 }
  0x74   : > { %s1879_s25 = sshra.s32 %s381_s29, 4  ;;  %s1886_s14 = scalar_lea.hbm %s2464_s4, 256  ;;  %s1880_s25 = int_to_ptr.hbm [resolvable:$true] %s1879_s25 }
  0x75   : > { %s1881_s26 = scalar_lea.hbm %s1880_s25, 128  ;;  %p1887_p7 = scmp.lt.s32.totalorder %s1880_s25, %s2464_s4 }
  0x76   : > { %p1882_p4 = scmp.ne.s32.totalorder %s1880_s25, %s1881_s26  ;;  %p1888_p8 = scmp.lt.s32.totalorder %s1886_s14, %s1881_s26 }
  0x78   : > { %p1884_p0 = pnand %p1882_p4, %p2144_p2  ;;  %p1889_p10 = por %p1888_p8, %p1887_p7 }
  0x7a   : > { %p1885_p5 = pneg %p1884_p0 }
  0x7c   : > { %p1890_p1 = pnand %p1889_p10, %p1885_p5 }
  0x7e   : > { %1893 = shalt.err (!%p1890_p1)
}
  0x7f   : > { %s2504_s24 = smov 64   ;;  %s1361_s0 = sshll.u32 %s2125_s18, 6 }
  0x80   : > { %1709 = dma.hbm_to_vmem [thread:$0]  (!%p2127_p13), %s381_s29, 2048, %s383_s16, %s2176_s10, %s2504_s24, %s2504_s24, %s2022_s23  }
  0x81   : > { %s1619_s12 = sshll.u32 %s2017_s30, 6  ;;  %s402_s17 = scalar_lea.vmem [#allocation11], %s1361_s0 }
  0x82   : > { %s407_s27 = scalar_lea.hbm %s2466_s6, %s1619_s12  ;;  %s410_s25 = sshll.u32 %s402_s17, 4  ;;  %s411_s25 = int_to_ptr.vmem [resolvable:$true] %s410_s25 }
  0x83   : > { %s408_s26 = sshll.u32 %s407_s27, 4  ;;  %s399_s22 = scalar_lea.sflag [#allocation12], %s2125_s18  ;;  %s409_s26 = int_to_ptr.hbm [resolvable:$true] %s408_s26 }
  0x84   : > { %s1909_s13 = sshra.s32 %s409_s26, 4  ;;  %s1916_s16 = scalar_lea.hbm %s2466_s6, 128  ;;  %s1910_s13 = int_to_ptr.hbm [resolvable:$true] %s1909_s13 }
  0x85   : > { %s1911_s14 = scalar_lea.hbm %s1910_s13, 64  ;;  %p1917_p7 = scmp.lt.s32.totalorder %s1910_s13, %s2466_s6 }
  0x86   : > { %p1912_p4 = scmp.ne.s32.totalorder %s1910_s13, %s1911_s14  ;;  %p1918_p8 = scmp.lt.s32.totalorder %s1916_s16, %s1911_s14 }
  0x88   : > { %p1914_p0 = pnand %p1912_p4, %p2144_p2  ;;  %p1919_p10 = por %p1918_p8, %p1917_p7 }
  0x8a   : > { %p1915_p5 = pneg %p1914_p0 }
  0x8c   : > { %p1920_p1 = pnand %p1919_p10, %p1915_p5 }
  0x8e   : > { %1923 = shalt.err (!%p1920_p1)
}
  0x8f   : > { %1712 = dma.hbm_to_vmem [thread:$0]  (!%p2127_p13), %s409_s26, 1024, %s411_s25, %s399_s22, %s2504_s24, %s2504_s24, %s2022_s23  }
  0x90   : > { %428 = sbr.rel (%p2167_p3) target bundleno = 781 (0x30d), region = 52  ;;  %s2268_s11 = sand.u32 (!%p2167_p3), 1, %s2009_s28  }
  0x91   : > { %s1365_s18 = sshll.u32 (!%p2167_p3), %s2268_s11, 3  ;;  %s431_s0 = scalar_lea.sflag (!%p2167_p3), [#allocation3], %s2268_s11 }
  0x92   : > { %s2272_s12 = scalar_lea.vmem (!%p2167_p3), [#allocation2], %s1365_s18 }
  0x95   : > { %1984 = dma.done.wait (%p2109_p6), %s431_s0, 128  }
  0x96   : > { %1986 = vsyncadd (%p2109_p6), %s431_s0, 4294967168  ;;  %s440_s19 = sand.u32 1, %s2091_s9   ;;  %s1366_s21 = sshll.u32 %s2268_s11, 4 }
  0x97   : > { %s441_s23 = scalar_lea.sflag [#allocation6], %s440_s19  ;;  %s2282_s24 = scalar_lea.vmem [#allocation5], %s1366_s21 }
  0x98   : > { %1988 = dma.done.wait (%p2109_p6), %s441_s23, 4352  }
  0x99   : > { %1990 = vsyncadd (%p2109_p6), %s441_s23, 4294962944  ;;  %s1367_s8 = sshll.u32 %s2268_s11, 8  ;;  %s1368_s3 = sshll.u32 %s2268_s11, 1 }
  0x9a   : > { %s2290_s27 = scalar_lea.vmem [#allocation7], %s1367_s8  ;;  %s461_s17 = scalar_lea.sflag [#allocation9], %s440_s19 }
  0x9b   : > { %s2292_s25 = scalar_lea.vmem [#allocation8], %s1368_s3 }
  0x9c   : > { %1992 = dma.done.wait (%p2109_p6), %s461_s17, 2080  }
  0x9d   : > { %1994 = vsyncadd (%p2109_p6), %s461_s17, 4294965216  ;;  %s1369_s26 = sshll.u32 %s2268_s11, 7  ;;  %s1370_s22 = sshll.u32 %s2268_s11, 6 }
  0x9e   : > { %s2300_s13 = scalar_lea.vmem [#allocation10], %s1369_s26  ;;  %s481_s14 = scalar_lea.sflag [#allocation12], %s2268_s11 }
  0x9f   : > { %s2303_s10 = scalar_lea.vmem [#allocation11], %s1370_s22 }
  0xa0   : > { %1996 = dma.done.wait (%p2109_p6), %s481_s14, 1024  }
  0xa1   : > { %1998 = vsyncadd (%p2109_p6), %s481_s14, 4294966272  ;;  %v1438_v0 = vld [vmem:[%s2290_s27 + $0x70] sm:$0xf]  ;;  %v1638_v1 = vld [vmem:[%s2290_s27 + $0x74] sm:$0xf0]  ;;  %vm831_vm0 = vcmask 130048  }
  0xa2   : > { %v1502_v2 = vld [vmem:[%s2290_s27 + $0xf0] sm:$0xf]  ;;  %v1439_v3 = vor.u32 %v1638_v1, %v1438_v0  ;;  %v1654_v4 = vld [vmem:[%s2290_s27 + $0xf4] sm:$0xf0]  ;;  %v1637_v5 = vld [vmem:[%s2290_s27 + $0x74] sm:$0xf] }
  0xa3   : > { %v1440_v6 = vld [vmem:[%s2290_s27 + $0x78] sm:$0xf0]  ;;  %v1503_v7 = vor.u32 %v1654_v4, %v1502_v2  ;;  %v1653_v9 = vld [vmem:[%s2290_s27 + $0xf4] sm:$0xf]  ;;  %v1430_v11 = vld [vmem:[%s2290_s27 + $0x60] sm:$0xf] }
  0xa4   : > { %v1443_v8 = vor.u32 %v1637_v5, %v1440_v6  ;;  %v1504_v10 = vld [vmem:[%s2290_s27 + $0xf8] sm:$0xf0]  ;;  %762 = vmatpush.bf16.msra.mxu0 %v1439_v3  ;;  %v1636_v13 = vld [vmem:[%s2290_s27 + $0x64] sm:$0xf0]  ;;  %v1494_v14 = vld [vmem:[%s2290_s27 + $0xe0] sm:$0xf] }
  0xa5   : > { %v1507_v12 = vor.u32 %v1653_v9, %v1504_v10  ;;  %v1652_v15 = vld [vmem:[%s2290_s27 + $0xe4] sm:$0xf0]  ;;  %776 = vmatpush.bf16.msra.mxu1 %v1503_v7  ;;  %v1431_v16 = vor.u32 %v1636_v13, %v1430_v11  ;;  %v1635_v18 = vld [vmem:[%s2290_s27 + $0x64] sm:$0xf]  ;;  %v1432_v19 = vld [vmem:[%s2290_s27 + $0x68] sm:$0xf0] }
  0xa6   : > { %790 = vmatpush.bf16.msra.mxu2 %v1443_v8  ;;  %v1495_v17 = vor.u32 %v1652_v15, %v1494_v14  ;;  %v1651_v20 = vld [vmem:[%s2290_s27 + $0xe4] sm:$0xf]  ;;  %v1435_v21 = vor.u32 %v1635_v18, %v1432_v19  ;;  %v1496_v22 = vld [vmem:[%s2290_s27 + $0xe8] sm:$0xf0]  ;;  %v1422_v23 = vld [vmem:[%s2290_s27 + $0x50] sm:$0xf] }
  0xa7   : > { %804 = vmatpush.bf16.msra.mxu3 %v1507_v12  ;;  %v1634_v24 = vld [vmem:[%s2290_s27 + $0x54] sm:$0xf0]  ;;  %v1499_v25 = vor.u32 %v1651_v20, %v1496_v22  ;;  %v1486_v26 = vld [vmem:[%s2290_s27 + $0xd0] sm:$0xf]  ;;  %v1633_v28 = vld [vmem:[%s2290_s27 + $0x54] sm:$0xf] }
  0xa8   : > { %v1650_v27 = vld [vmem:[%s2290_s27 + $0xd4] sm:$0xf0]  ;;  %763 = vmatpush.bf16.msra.mxu0 %v1431_v16  ;;  %v1423_v29 = vor.u32 %v1634_v24, %v1422_v23  ;;  %v1424_v30 = vld [vmem:[%s2290_s27 + $0x58] sm:$0xf0]  ;;  %v1649_v31 = vld [vmem:[%s2290_s27 + $0xd4] sm:$0xf] }
  0xa9   : > { %v1488_v32 = vld [vmem:[%s2290_s27 + $0xd8] sm:$0xf0]  ;;  %777 = vmatpush.bf16.msra.mxu1 %v1495_v17  ;;  %v1487_v33 = vor.u32 %v1650_v27, %v1486_v26  ;;  %v1427_v34 = vor.u32 %v1633_v28, %v1424_v30  ;;  %v1414_v35 = vld [vmem:[%s2290_s27 + $0x40] sm:$0xf]  ;;  %v1632_v36 = vld [vmem:[%s2290_s27 + $0x44] sm:$0xf0] }
  0xaa   : > { %791 = vmatpush.bf16.msra.mxu2 %v1435_v21  ;;  %v1478_v37 = vld [vmem:[%s2290_s27 + $0xc0] sm:$0xf]  ;;  %v1491_v38 = vor.u32 %v1649_v31, %v1488_v32  ;;  %v1648_v39 = vld [vmem:[%s2290_s27 + $0xc4] sm:$0xf0]  ;;  %v1631_v40 = vld [vmem:[%s2290_s27 + $0x44] sm:$0xf]  ;;  %v1415_v44 = vor.u32 %v1632_v36, %v1414_v35 }
  0xab   : > { %805 = vmatpush.bf16.msra.mxu3 %v1499_v25  ;;  %v1416_v41 = vld [vmem:[%s2290_s27 + $0x48] sm:$0xf0]  ;;  %v1647_v42 = vld [vmem:[%s2290_s27 + $0xc4] sm:$0xf]  ;;  %v1479_v45 = vor.u32 %v1648_v39, %v1478_v37  ;;  %v1406_v47 = vld [vmem:[%s2290_s27 + $0x30] sm:$0xf] }
  0xac   : > { %v1480_v43 = vld [vmem:[%s2290_s27 + $0xc8] sm:$0xf0]  ;;  %764 = vmatpush.bf16.msra.mxu0 %v1423_v29  ;;  %v1419_v46 = vor.u32 %v1631_v40, %v1416_v41  ;;  %v1630_v48 = vld [vmem:[%s2290_s27 + $0x34] sm:$0xf0]  ;;  %v1470_v49 = vld [vmem:[%s2290_s27 + $0xb0] sm:$0xf] }
  0xad   : > { %778 = vmatpush.bf16.msra.mxu1 %v1487_v33  ;;  %v1483_v50 = vor.u32 %v1647_v42, %v1480_v43  ;;  %v1646_v51 = vld [vmem:[%s2290_s27 + $0xb4] sm:$0xf0]  ;;  %v1629_v52 = vld [vmem:[%s2290_s27 + $0x34] sm:$0xf]  ;;  %v1408_v53 = vld [vmem:[%s2290_s27 + $0x38] sm:$0xf0]  ;;  %v1407_v56 = vor.u32 %v1630_v48, %v1406_v47 }
  0xae   : > { %792 = vmatpush.bf16.msra.mxu2 %v1427_v34  ;;  %v1645_v54 = vld [vmem:[%s2290_s27 + $0xb4] sm:$0xf]  ;;  %v1472_v55 = vld [vmem:[%s2290_s27 + $0xb8] sm:$0xf0]  ;;  %v1471_v57 = vor.u32 %v1646_v51, %v1470_v49  ;;  %v1411_v58 = vor.u32 %v1629_v52, %v1408_v53  ;;  %v1398_v59 = vld [vmem:[%s2290_s27 + $0x20] sm:$0xf] }
  0xaf   : > { %806 = vmatpush.bf16.msra.mxu3 %v1491_v38  ;;  %v1628_v60 = vld [vmem:[%s2290_s27 + $0x24] sm:$0xf0]  ;;  %v1462_v61 = vld [vmem:[%s2290_s27 + $0xa0] sm:$0xf]  ;;  %v1475_v62 = vor.u32 %v1645_v54, %v1472_v55  ;;  %v1627_v0 = vld [vmem:[%s2290_s27 + $0x24] sm:$0xf] }
  0xb0   : > { %765 = vmatpush.bf16.msra.mxu0 %v1415_v44  ;;  %v1644_v63 = vld [vmem:[%s2290_s27 + $0xa4] sm:$0xf0]  ;;  %v1400_v1 = vld [vmem:[%s2290_s27 + $0x28] sm:$0xf0]  ;;  %v1643_v2 = vld [vmem:[%s2290_s27 + $0xa4] sm:$0xf]  ;;  %v1399_v4 = vor.u32 %v1628_v60, %v1398_v59 }
  0xb1   : > { %779 = vmatpush.bf16.msra.mxu1 %v1479_v45  ;;  %v1464_v3 = vld [vmem:[%s2290_s27 + $0xa8] sm:$0xf0]  ;;  %v1463_v5 = vor.u32 %v1644_v63, %v1462_v61  ;;  %v1403_v6 = vor.u32 %v1627_v0, %v1400_v1  ;;  %v1390_v7 = vld [vmem:[%s2290_s27 + $0x10] sm:$0xf]  ;;  %v1626_v8 = vld [vmem:[%s2290_s27 + $0x14] sm:$0xf0] }
  0xb2   : > { %793 = vmatpush.bf16.msra.mxu2 %v1419_v46  ;;  %v1454_v9 = vld [vmem:[%s2290_s27 + $0x90] sm:$0xf]  ;;  %v1467_v10 = vor.u32 %v1643_v2, %v1464_v3  ;;  %v1642_v11 = vld [vmem:[%s2290_s27 + $0x94] sm:$0xf0]  ;;  %v1625_v12 = vld [vmem:[%s2290_s27 + $0x14] sm:$0xf]  ;;  %v1391_v16 = vor.u32 %v1626_v8, %v1390_v7 }
  0xb3   : > { %807 = vmatpush.bf16.msra.mxu3 %v1483_v50  ;;  %v1392_v13 = vld [vmem:[%s2290_s27 + $0x18] sm:$0xf0]  ;;  %v1641_v14 = vld [vmem:[%s2290_s27 + $0x94] sm:$0xf]  ;;  %v1455_v17 = vor.u32 %v1642_v11, %v1454_v9  ;;  %v1382_v19 = vld [vmem:[%s2290_s27] sm:$0xf] }
  0xb4   : > { %766 = vmatpush.bf16.msra.mxu0 %v1407_v56  ;;  %v1456_v15 = vld [vmem:[%s2290_s27 + $0x98] sm:$0xf0]  ;;  %v1395_v18 = vor.u32 %v1625_v12, %v1392_v13  ;;  %v1624_v20 = vld [vmem:[%s2290_s27 + $0x4] sm:$0xf0]  ;;  %v1446_v21 = vld [vmem:[%s2290_s27 + $0x80] sm:$0xf] }
  0xb5   : > { %780 = vmatpush.bf16.msra.mxu1 %v1471_v57  ;;  %v1459_v22 = vor.u32 %v1641_v14, %v1456_v15  ;;  %v1640_v23 = vld [vmem:[%s2290_s27 + $0x84] sm:$0xf0]  ;;  %v1623_v24 = vld [vmem:[%s2290_s27 + $0x4] sm:$0xf]  ;;  %v1384_v25 = vld [vmem:[%s2290_s27 + $0x8] sm:$0xf0]  ;;  %v1383_v28 = vor.u32 %v1624_v20, %v1382_v19 }
  0xb6   : > { %794 = vmatpush.bf16.msra.mxu2 %v1411_v58  ;;  %v1639_v26 = vld [vmem:[%s2290_s27 + $0x84] sm:$0xf]  ;;  %v1448_v27 = vld [vmem:[%s2290_s27 + $0x88] sm:$0xf0]  ;;  %v1374_v29 = vld [vmem:[%s2282_s24] sm:$0xf]  ;;  %v1447_v31 = vor.u32 %v1640_v23, %v1446_v21  ;;  %v1387_v32 = vor.u32 %v1623_v24, %v1384_v25 }
  0xb7   : > { %808 = vmatpush.bf16.msra.mxu3 %v1475_v62  ;;  %v1622_v30 = vld [vmem:[%s2282_s24 + $0x4] sm:$0xf0]  ;;  %v1621_v33 = vld [vmem:[%s2282_s24 + $0x4] sm:$0xf]  ;;  %v1376_v34 = vld [vmem:[%s2282_s24 + $0x8] sm:$0xf0]  ;;  %v1451_v35 = vor.u32 %v1639_v26, %v1448_v27 }
  0xb8   : > { %767 = vmatpush.bf16.msra.mxu0 %v1399_v4  ;;  %v1375_v36 = vor.u32 %v1622_v30, %v1374_v29  ;;  %v1379_v37 = vor.u32 %v1621_v33, %v1376_v34  ;;  %v1662_v40 = vld [vmem:[%s2300_s13 + $0x38] sm:$0xff]  ;;  %v1661_v41 = vld [vmem:[%s2300_s13 + $0x30] sm:$0xff]  ;;  %v1660_v43 = vld [vmem:[%s2300_s13 + $0x28] sm:$0xff]  ;;  %p549_p6 = scmp.lt.s32.totalorder %s2091_s9, 1  ;;  %s1679_s8 = sshll.u32 %s2091_s9, 4 }
  0xb9   : > { %781 = vmatpush.bf16.msra.mxu1 %v1463_v5  ;;  %v1659_v49 = vld [vmem:[%s2300_s13 + $0x20] sm:$0xff]  ;;  %v1620_v51 = vld [vmem:[%s2272_s12] sm:$0xff]  ;;  %v820_v5 = vld [vmem:[%s2292_s25] sm:$0x3]  ;;  %s2505_s17 = sld [smem:[#allocation28_spill]]  ;;  %s548_s22 = scalar_lea.vmem [#allocation13], %s1366_s21 }
  0xba   : > { %795 = vmatpush.bf16.msra.mxu2 %v1403_v6  ;;  %s2384_s15 = scalar_select %p549_p6, %s2091_s9, 1  ;;  %v1658_v57 = vld [vmem:[%s2300_s13 + $0x18] sm:$0xff]  ;;  %v1657_v59 = vld [vmem:[%s2300_s13 + $0x10] sm:$0xff]  ;;  %v1656_v61 = vld [vmem:[%s2300_s13 + $0x8] sm:$0xff]  ;;  %v822_v7 = vperm.slane %v820_v5, 0 }
  0xbb   : > { %809 = vmatpush.bf16.msra.mxu3 %v1467_v10  ;;  %v1670_v58 = vld [vmem:[%s2300_s13 + $0x78] sm:$0xff]  ;;  %v1669_v60 = vld [vmem:[%s2300_s13 + $0x70] sm:$0xff]  ;;  %v1668_v62 = vld [vmem:[%s2300_s13 + $0x68] sm:$0xff] }
  0xbc   : > { %768 = vmatpush.bf16.msra.mxu0 %v1391_v16  ;;  %s551_s1 = scalar_lea.vmem %s2465_s5, %s2384_s15  ;;  %v1655_v63 = vld [vmem:[%s2300_s13] sm:$0xff]  ;;  %v1666_v1 = vld [vmem:[%s2300_s13 + $0x58] sm:$0xff]  ;;  %v1665_v2 = vld [vmem:[%s2300_s13 + $0x50] sm:$0xff]  ;;  %s554_s0 = scalar_lea.vmem %s2467_s7, %s2384_s15 }
  0xbd   : > { %782 = vmatpush.bf16.msra.mxu1 %v1455_v17  ;;  %v1667_v0 = vld [vmem:[%s2300_s13 + $0x60] sm:$0xff]  ;;  %v1664_v3 = vld [vmem:[%s2300_s13 + $0x48] sm:$0xff]  ;;  %v823_v17 = vperm.slane %v820_v5, 1  ;;  %v1678_v26 = vld [vmem:[%s2303_s10 + $0x38] sm:$0xff] }
  0xbe   : > { %796 = vmatpush.bf16.msra.mxu2 %v1395_v18  ;;  %v1663_v4 = vld [vmem:[%s2300_s13 + $0x40] sm:$0xff]  ;;  %v1677_v27 = vld [vmem:[%s2303_s10 + $0x30] sm:$0xff]  ;;  %v1674_v30 = vld [vmem:[%s2303_s10 + $0x18] sm:$0xff]  ;;  %s1141_s13 = sshll.u32 %s548_s22, 4  ;;  %s1142_s13 = int_to_ptr.vmem [resolvable:$true] %s1141_s13 }
  0xbf   : > { %810 = vmatpush.bf16.msra.mxu3 %v1459_v22  ;;  %v1675_v29 = vld [vmem:[%s2303_s10 + $0x20] sm:$0xff]  ;;  %s1140_s26 = scalar_lea.hbm %s2505_s17, %s1679_s8  ;;  %s1959_s21 = scalar_lea.hbm %s2505_s17, 32 }
  0xc0   : > { %769 = vmatpush.bf16.msra.mxu0 %v1383_v28  ;;  %v1676_v28 = vld [vmem:[%s2303_s10 + $0x28] sm:$0xff]  ;;  %v1671_v33 = vld [vmem:[%s2303_s10] sm:$0xff]  ;;  %s1143_s14 = sshll.u32 %s1140_s26, 4  ;;  %s1144_s14 = int_to_ptr.hbm [resolvable:$true] %s1143_s14 }
  0xc1   : > { %783 = vmatpush.bf16.msra.mxu1 %v1447_v31  ;;  %v1673_v31 = vld [vmem:[%s2303_s10 + $0x10] sm:$0xff]  ;;  %s1953_s15 = sshra.s32 %s1144_s14, 4  ;;  %s1954_s15 = int_to_ptr.hbm [resolvable:$true] %s1953_s15 }
  0xc2   : > { %797 = vmatpush.bf16.msra.mxu2 %v1387_v32  ;;  %v1672_v32 = vld [vmem:[%s2303_s10 + $0x8] sm:$0xff]  ;;  %s1129_s10 = scalar_lea.sflag [#allocation4], %s2268_s11  ;;  %s1955_s9 = scalar_lea.hbm %s1954_s15, 16 }
  0xc3   : > { %811 = vmatpush.bf16.msra.mxu3 %v1451_v35  ;;  %770 = vmatmul.bf16.vlgmr.msra.gmra.mxu0 %v1375_v36  ;;  %v1757_v35 = vld [vmem:[%s551_s1] ss:$0 sm:$0xff]  ;;  %p1956_p13 = scmp.ne.s32.totalorder %s1954_s15, %s1955_s9  ;;  %p1960_p4 = scmp.lt.s32.totalorder %s1954_s15, %s2505_s17 }
  0xc4   : > { %784 = vmatmul.bf16.vlgmr.msra.gmra.mxu1 %v1379_v37  ;;  %1112 = vmatpush.bf16.msrb.mxu0 %v1678_v26  ;;  %p1961_p0 = scmp.lt.s32.totalorder %s1959_s21, %s1955_s9 }
  0xc5   : > { %798 = vmatmul.bf16.vlgmr.msra.gmra.mxu2 %v1375_v36  ;;  %p1957_p2 = pnand %p1956_p13, %p2116_p11 }
  0xc6   : > { %812 = vmatmul.bf16.vlgmr.msra.gmra.mxu3 %v1379_v37  ;;  %1009 = vmatpush.bf16.msrb.mxu2 %v1662_v40  ;;  %p1962_p5 = por %p1961_p0, %p1960_p4 }
  0xc7   : > { %1023 = vmatpush.bf16.msrb.mxu3 %v1670_v58  ;;  %p1958_p3 = pneg %p1957_p2 }
  0xc8   : > { %1113 = vmatpush.bf16.msrb.mxu0 %v1677_v27 }
  0xc9   : > { %p1963_p7 = pnand %p1962_p5, %p1958_p3 }
  0xca   : > { %1010 = vmatpush.bf16.msrb.mxu2 %v1661_v41 }
  0xcb   : > { %1024 = vmatpush.bf16.msrb.mxu3 %v1669_v60 }
  0xcc   : > { %1114 = vmatpush.bf16.msrb.mxu0 %v1676_v28 }
  0xce   : > { %1011 = vmatpush.bf16.msrb.mxu2 %v1660_v43 }
  0xcf   : > { %1025 = vmatpush.bf16.msrb.mxu3 %v1668_v62 }
  0xd0   : > { %1115 = vmatpush.bf16.msrb.mxu0 %v1675_v29 }
  0xd2   : > { %1012 = vmatpush.bf16.msrb.mxu2 %v1659_v49 }
  0xd3   : > { %1026 = vmatpush.bf16.msrb.mxu3 %v1667_v0 }
  0xd4   : > { %1116 = vmatpush.bf16.msrb.mxu0 %v1674_v30 }
  0xd6   : > { %1013 = vmatpush.bf16.msrb.mxu2 %v1658_v57 }
  0xd7   : > { %1027 = vmatpush.bf16.msrb.mxu3 %v1666_v1 }
  0xd8   : > { %1117 = vmatpush.bf16.msrb.mxu0 %v1673_v31 }
  0xda   : > { %1014 = vmatpush.bf16.msrb.mxu2 %v1657_v59 }
  0xdb   : > { %1028 = vmatpush.bf16.msrb.mxu3 %v1665_v2 }
  0xdc   : > { %1118 = vmatpush.bf16.msrb.mxu0 %v1672_v32 }
  0xde   : > { %1015 = vmatpush.bf16.msrb.mxu2 %v1656_v61 }
  0xdf   : > { %1029 = vmatpush.bf16.msrb.mxu3 %v1664_v3 }
  0xe0   : > { %1119 = vmatpush.bf16.msrb.mxu0 %v1671_v33 }
  0xe2   : > { %1016 = vmatpush.bf16.msrb.mxu2 %v1655_v63 }
  0xe3   : > { %1030 = vmatpush.bf16.msrb.mxu3 %v1663_v4 }
 0x140   : > { %v771_v38 = vpop.f32.mrf.mxu0 }
 0x141   : > { %v785_v39 = vpop.f32.mrf.mxu1 }
 0x142   : > { %v786_v47 = vadd.f32 %v785_v39, %v771_v38 }
 0x148   : > { %v799_v42 = vpop.f32.mrf.mxu2  ;;  %v773_v44 = vpop.f32.mrf.mxu0 }
 0x149   : > { %v813_v45 = vpop.f32.mrf.mxu3  ;;  %v787_v46 = vpop.f32.mrf.mxu1 }
 0x14a   : > { %v788_v48 = vadd.f32 %v787_v46, %v773_v44  ;;  %v814_v52 = vadd.f32 %v813_v45, %v799_v42 }
 0x14c   : > { %v818_v50 = vpack.c.bf16 %v788_v48, %v786_v47  ;;  %v1758_v48 = vld [vmem:[%s554_s0] ss:$0 sm:$0xff] }
 0x14e   : > { %842 = vmatpush.bf16.msrb.mxu1 %v818_v50 }
 0x150   : > { %v801_v53 = vpop.f32.mrf.mxu2 }
 0x151   : > { %v815_v54 = vpop.f32.mrf.mxu3  ;;  %1512 = vmatmul.msk.bf16.vlgmr.msrb.gmra.mxu1 %vm831_vm0, %v1620_v51 }
 0x152   : > { %v816_v55 = vadd.f32 %v815_v54, %v801_v53 }
 0x154   : > { %v819_v56 = vpack.c.bf16 %v816_v55, %v814_v52 }
 0x156   : > { %856 = vmatpush.bf16.msra.mxu1 %v819_v56 }
 0x161   : > { %1513 = vmatmul.msk.bf16.vlgmr.msra.gmra.mxu1 %vm831_vm0, %v1620_v51 }
 0x1ce   : > { %v844_v6 = vpop.f32.mrf.mxu1 }
 0x1cf   : > { %v845_v8 = vadd.f32 %v844_v6, %v822_v7 }
 0x1d1   : > { %v867_v10 = vmul.f32 0.01, %v845_v8  ;;  %vm863_vm1 = vcmp.ge.f32.partialorder %v845_v8, 0.0 }
 0x1d3   : > { %v871_v13 = vsel %vm863_vm1, %v845_v8, %v867_v10 }
 0x1d6   : > { %v846_v9 = vpop.f32.mrf.mxu1 }
 0x1d7   : > { %v847_v11 = vadd.f32 %v846_v9, %v822_v7 }
 0x1d9   : > { %vm865_vm2 = vcmp.ge.f32.partialorder %v847_v11, 0.0  ;;  %v869_v12 = vmul.f32 0.01, %v847_v11 }
 0x1db   : > { %v873_v14 = vsel %vm865_vm2, %v847_v11, %v869_v12 }
 0x1dc   : > { %v875_v15 = vpack.c.bf16 %v873_v14, %v871_v13 }
 0x1de   : > { %v858_v16 = vpop.f32.mrf.mxu1  ;;  %1017 = vmatmul.bf16.vlgmr.msrb.gmra.mxu2 %v875_v15 }
 0x1df   : > { %v859_v18 = vadd.f32 %v858_v16, %v823_v17 }
 0x1e1   : > { %v868_v20 = vmul.f32 0.01, %v859_v18  ;;  %vm864_vm3 = vcmp.ge.f32.partialorder %v859_v18, 0.0 }
 0x1e3   : > { %v872_v23 = vsel %vm864_vm3, %v859_v18, %v868_v20 }
 0x1e6   : > { %v860_v19 = vpop.f32.mrf.mxu1 }
 0x1e7   : > { %v861_v21 = vadd.f32 %v860_v19, %v823_v17 }
 0x1e9   : > { %vm866_vm4 = vcmp.ge.f32.partialorder %v861_v21, 0.0  ;;  %v870_v22 = vmul.f32 0.01, %v861_v21 }
 0x1eb   : > { %v874_v24 = vsel %vm866_vm4, %v861_v21, %v870_v22 }
 0x1ec   : > { %v876_v25 = vpack.c.bf16 %v874_v24, %v872_v23 }
 0x1ee   : > { %1031 = vmatmul.bf16.vlgmr.msrb.gmra.mxu3 %v876_v25 }
 0x261   : > { %v1018_v34 = vpop.f32.mrf.mxu2 }
 0x262   : > { %v1019_v37 = vadd.f32 %v1757_v35, %v1018_v34 }
 0x269   : > { %v1020_v38 = vpop.f32.mrf.mxu2 }
 0x26a   : > { %v1021_v40 = vadd.f32 %v1757_v35, %v1020_v38 }
 0x271   : > { %v1032_v36 = vpop.f32.mrf.mxu3 }
 0x272   : > { %v1033_v39 = vadd.f32 %v1032_v36, %v1019_v37 }
 0x274   : > { %v1039_v42 = vmul.f32 0.01, %v1033_v39  ;;  %vm1037_vm5 = vcmp.ge.f32.partialorder %v1033_v39, 0.0 }
 0x276   : > { %v1041_v45 = vsel %vm1037_vm5, %v1033_v39, %v1039_v42 }
 0x279   : > { %v1034_v41 = vpop.f32.mrf.mxu3 }
 0x27a   : > { %v1035_v43 = vadd.f32 %v1034_v41, %v1021_v40 }
 0x27c   : > { %vm1038_vm6 = vcmp.ge.f32.partialorder %v1035_v43, 0.0  ;;  %v1040_v44 = vmul.f32 0.01, %v1035_v43 }
 0x27e   : > { %v1042_v46 = vsel %vm1038_vm6, %v1035_v43, %v1040_v44 }
 0x27f   : > { %v1043_v47 = vpack.c.bf16 %v1042_v46, %v1041_v45 }
 0x281   : > { %1120 = vmatmul.bf16.vlgmr.msrb.gmra.mxu0 %v1043_v47 }
 0x2fe   : > { %v1121_v49 = vpop.f32.mrf.mxu0 }
 0x2ff   : > { %v1122_v50 = vadd.f32 %v1758_v48, %v1121_v49 }
 0x301   : > { %1126 = vst [vmem:[%s548_s22] sm:$0xff] %v1122_v50 }
 0x306   : > { %v1123_v51 = vpop.f32.mrf.mxu0 }
 0x307   : > { %v1124_v52 = vadd.f32 %v1758_v48, %v1123_v51 }
 0x309   : > { %1127 = vst [vmem:[%s548_s22 + $0x8] sm:$0xff] %v1124_v52 }
 0x30a   : > { %1966 = shalt.err (!%p1963_p7)
}
 0x30b   : > { %s2023_s11 = smov 128   ;;  %s2024_s18 = smov 8  }
 0x30c   : > { %1692 = dma.vmem_to_hbm [thread:$0]  (%p2116_p11), %s1142_s13, 256, %s1144_s14, %s1129_s10, %s2023_s11, %s2023_s11, %s2024_s18  }
 0x30d PF: > { %s2507_s0 = sld [smem:[#allocation19_spill]]  ;;  %p1714_p8 = pnand %p1346_p9, %p2120_p12 }
 0x30f   : > { %p1715_p10 = pneg %p1714_p8 }
 0x313   : > { %s1158_s19 = sand.u32 1, %s2507_s0  }
 0x314   : > { %s1159_s23 = scalar_lea.sflag [#allocation4], %s1158_s19 }
 0x315   : > { %2000 = dma.done.wait (%p1715_p10), %s1159_s23, 256  }
 0x316   : > { %2002 = vsyncadd (%p1715_p10), %s1159_s23, 4294967040  ;;  %s2509_s30 = sld [smem:[#allocation21_spill]]  ;;  %s2512_s27 = smov %s2009_s28 }
 0x317   : > { %s2510_s24 = sld [smem:[#allocation20_spill]] }
 0x318   : > { %s2511_s29 = sld [smem:[#allocation22_spill]] }
 0x31c   : > { %p30_p1 = scmp.ge.s32.totalorder %s2509_s30, 4  }
 0x31d   : > { %s2513_s28 = smov %s2510_s24 }
 0x31e   :  { %32 = sbr.rel (!%p30_p1) target bundleno = 16 (0x10), region = 164 }
 0x323   :  { %1165 = vsyncpa [#allocation3], 1 }
 0x324   :  { %1167 = vsyncpa [#allocation3 + $0x1], 1 }
 0x325   :  { %1168 = vsyncpa [#allocation6], 1 }
 0x326   :  { %1170 = vsyncpa [#allocation6 + $0x1], 1 }
 0x327   :  { %1171 = vsyncpa [#allocation9], 1 }
 0x328   :  { %1173 = vsyncpa [#allocation9 + $0x1], 1 }
 0x329   :  { %1174 = vsyncpa [#allocation12], 1 }
 0x32a   :  { %1176 = vsyncpa [#allocation12 + $0x1], 1 }
 0x32b   :  { %1177 = vsyncpa [#allocation4], 1 }
 0x32c   :  { %1179 = vsyncpa [#allocation4 + $0x1], 1 }

</bundles_post_ra>
